<compile_context>
chip_gen: v7x
topology: tpu7x:2x2x1
jax: 0.10.0
libtpu: 0.0.40
codegen_flags: <defaults>
</compile_context>

<pallas_src>
import functools

import jax
import jax.numpy as jnp
from jax.experimental import pallas as pl
from jax.experimental.pallas import tpu as pltpu

GAMMA = 2.0  # module default


def _focal_loss_kernel(logits_ref, targets_ref, out_ref, acc_ref, *, n_total, gamma):
    # logits_ref : [TILE_N, C]  (VMEM, native dtype)
    # targets_ref: [TILE_N, 1]  (VMEM, int32)
    # out_ref    : [1, 1]       (SMEM, f32 scalar result)
    # acc_ref    : [1]          (SMEM f32 scratch, persists across grid steps)
    i = pl.program_id(0)
    last = pl.num_programs(0) - 1

    @pl.when(i == 0)
    def _():
        acc_ref[0] = jnp.float32(0.0)

    # Upcast in-kernel (bf16 inputs stay bf16 over HBM; f32 math on all gens).
    logits = logits_ref[...].astype(jnp.float32)        # [TILE_N, C]
    tgt = targets_ref[...]                              # [TILE_N, 1] int32

    tn, c = logits.shape

    # Numerically stable log-softmax pieces. Everything downstream uses
    # `shifted`, so the raw logits tile is dead after the subtraction.
    m = jnp.max(logits, axis=-1, keepdims=True)                         # [TILE_N, 1]
    shifted = logits - m                                                # [TILE_N, C]
    lse = jnp.log(jnp.sum(jnp.exp(shifted), axis=-1, keepdims=True))    # [TILE_N, 1]

    # True-class (shifted) logit via a lane-iota compare (no dynamic gather).
    cls_idx = jax.lax.broadcasted_iota(jnp.int32, (tn, c), 1)           # [TILE_N, C]
    true_shifted = jnp.sum(
        jnp.where(cls_idx == tgt, shifted, 0.0), axis=-1, keepdims=True
    )                                                                   # [TILE_N, 1]

    # per-sample CE = logsumexp(logits) - logits[target]
    #              = (lse + m) - (true_shifted + m) = lse - true_shifted
    per_sample_ce = lse - true_shifted                                  # [TILE_N, 1]

    # Mask rows past the true N (the last tile may overhang the array; the
    # overhang data is whatever the clamped DMA fetched, but jnp.where selects
    # it away and the shifted/exp path keeps it finite regardless).
    row = jax.lax.broadcasted_iota(jnp.int32, (tn, 1), 0) + i * tn
    partial = jnp.sum(jnp.where(row < n_total, per_sample_ce, 0.0))

    acc_ref[0] += partial

    @pl.when(i == last)
    def _():
        ce = acc_ref[0] * jnp.float32(1.0 / n_total)    # mean over the GLOBAL N
        pt = jnp.exp(-ce)
        one_minus_pt = 1.0 - pt
        if gamma == 2.0:
            focal = (one_minus_pt * one_minus_pt) * ce  # exact, robust square
        else:
            focal = jnp.power(jnp.maximum(one_minus_pt, 0.0), jnp.float32(gamma)) * ce
        out_ref[0, 0] = focal


def focal_loss(inputs, targets, *, gamma=GAMMA, tile_n=None):
    """inputs: [N, C] float (f32 or bf16) logits; targets: [N] int class indices.
    Returns the scalar focal loss (reduction='mean', weight=None)."""
    n, c = inputs.shape
    targets_2d = targets.reshape(n, 1).astype(jnp.int32)

    # Size the row tile against a ~8 MiB logits block (=> ~16 MiB double-
    # buffered), which fits v7x's smaller VMEM with headroom and keeps the
    # mem-bound pipeline near the HBM roofline on v5e/v6e too.
    bytes_per_row = max(1, c * inputs.dtype.itemsize)
    budget_rows = max(8, (8 * 1024 * 1024) // bytes_per_row)
    if tile_n is None:
        tile_n = budget_rows
    tile_n = min(tile_n, budget_rows)
    if n <= tile_n:
        tile_n = n                          # single full block; any N is a legal block dim
    else:
        tile_n = max(8, (tile_n // 8) * 8)  # sub-blocks: sublane dim must be 8-aligned

    grid = (pl.cdiv(n, tile_n),)

    kernel = functools.partial(_focal_loss_kernel, n_total=n, gamma=float(gamma))

    cost = pl.CostEstimate(
        flops=5 * n * c,
        transcendentals=n * c,
        bytes_accessed=n * c * inputs.dtype.itemsize + n * 4 + 4,
    )

    out = pl.pallas_call(
        kernel,
        out_shape=jax.ShapeDtypeStruct((1, 1), jnp.float32),
        grid=grid,
        in_specs=[
            pl.BlockSpec((tile_n, c), lambda i: (i, 0)),   # logits row tile
            pl.BlockSpec((tile_n, 1), lambda i: (i, 0)),   # targets row tile
        ],
        out_specs=pl.BlockSpec(memory_space=pltpu.SMEM),   # scalar result in SMEM
        scratch_shapes=[pltpu.SMEM((1,), jnp.float32)],    # running CE sum
        compiler_params=pltpu.CompilerParams(
            dimension_semantics=("arbitrary",),            # sequential accumulation
            vmem_limit_bytes=32 * 1024 * 1024,
        ),
        cost_estimate=cost,
    )(inputs, targets_2d)
    return out[0, 0]


def _focal_loss_reference(inputs, targets, gamma=GAMMA):
    # Plain-JAX reference mirroring torch.nn.CrossEntropyLoss + focal transform.
    logp = jax.nn.log_softmax(inputs.astype(jnp.float32), axis=-1)
    per_sample = -jnp.take_along_axis(logp, targets[:, None], axis=-1)[:, 0]
    ce = jnp.mean(per_sample)
    pt = jnp.exp(-ce)
    return (1.0 - pt) ** gamma * ce


if __name__ == "__main__":
    key = jax.random.PRNGKey(0)
    k1, k2, k3, k4, k5, k6 = jax.random.split(key, 6)

    # Small demo shapes: 8 samples x 16 classes (single-tile path).
    N, C = 8, 16
    inputs = jax.random.normal(k1, (N, C), dtype=jnp.float32)
    targets = jax.random.randint(k2, (N,), 0, C, dtype=jnp.int32)

    loss = focal_loss(inputs, targets)
    jax.block_until_ready(loss)
    ref = _focal_loss_reference(inputs, targets)
    assert jnp.allclose(loss, ref, atol=1e-5, rtol=1e-5), (loss, ref)

    # Multi-tile path: grid accumulation + masked overhanging last tile.
    N2, C2 = 40, 16
    inputs2 = jax.random.normal(k3, (N2, C2), dtype=jnp.float32)
    targets2 = jax.random.randint(k4, (N2,), 0, C2, dtype=jnp.int32)
    loss2 = focal_loss(inputs2, targets2, tile_n=16)   # grid=(3,), last tile padded
    jax.block_until_ready(loss2)
    ref2 = _focal_loss_reference(inputs2, targets2)
    assert jnp.allclose(loss2, ref2, atol=1e-5, rtol=1e-5), (loss2, ref2)

    # bf16 inputs (upcast to f32 inside the kernel).
    N3, C3 = 24, 32
    inputs3 = jax.random.normal(k5, (N3, C3), dtype=jnp.bfloat16)
    targets3 = jax.random.randint(k6, (N3,), 0, C3, dtype=jnp.int32)
    loss3 = focal_loss(inputs3, targets3, tile_n=8)    # grid=(3,)
    jax.block_until_ready(loss3)
    ref3 = _focal_loss_reference(inputs3, targets3)
    assert jnp.allclose(loss3, ref3, atol=2e-3, rtol=2e-3), (loss3, ref3)

    print("KERNEL_OK")
</pallas_src>

<mosaic_0001>
module attributes {stable_mosaic.version = 11 : i64} {
  func.func @_focal_loss_kernel(%arg0: i32, %arg1: memref<8x16xf32, #tpu.memory_space<vmem>>, %arg2: memref<8x1xi32, #tpu.memory_space<vmem>>, %arg3: memref<1x1xf32, #tpu.memory_space<smem>>, %arg4: memref<1xf32, #tpu.memory_space<smem>>) attributes {dimension_semantics = [#tpu.dimension_semantics<arbitrary>], iteration_bounds = array<i64: 1>, scalar_prefetch = 0 : i64, scratch_operands = 1 : i64, tpu.core_type = #tpu.core_type<tc>, window_params = [{transform_indices = @transform_0, window_bounds = array<i64: 8, 16>}, {transform_indices = @transform_1, window_bounds = array<i64: 8, 1>}, {transform_indices = @transform_2, window_bounds = array<i64: 1, 1>}]} {
    %c0_i32 = arith.constant 0 : i32
    %0 = arith.cmpi eq, %arg0, %c0_i32 : i32
    %1 = arith.extui %0 : i1 to i32
    %c0_i32_0 = arith.constant 0 : i32
    %2 = arith.cmpi ne, %1, %c0_i32_0 : i32
    scf.if %2 {
      %cst_14 = arith.constant 0.000000e+00 : f32
      %c0_15 = arith.constant 0 : index
      %39 = memref.load %arg4[%c0_15] : memref<1xf32, #tpu.memory_space<smem>>
      memref.store %cst_14, %arg4[%c0_15] : memref<1xf32, #tpu.memory_space<smem>>
    } else {
    }
    %c0 = arith.constant 0 : index
    %c0_1 = arith.constant 0 : index
    %3 = vector.load %arg1[%c0, %c0_1] : memref<8x16xf32, #tpu.memory_space<vmem>>, vector<8x16xf32>
    %c0_2 = arith.constant 0 : index
    %c0_3 = arith.constant 0 : index
    %4 = vector.load %arg2[%c0_2, %c0_3] : memref<8x1xi32, #tpu.memory_space<vmem>>, vector<8x1xi32>
    %cst = arith.constant dense<0xFF800000> : vector<8xf32>
    %5 = vector.multi_reduction <maximumf>, %3, %cst [1] : vector<8x16xf32> to vector<8xf32>
    %6 = vector.shape_cast %5 : vector<8xf32> to vector<8x1xf32>
    %7 = vector.broadcast %6 : vector<8x1xf32> to vector<8x16xf32>
    %8 = arith.subf %3, %7 : vector<8x16xf32>
    %9 = math.exp %8 : vector<8x16xf32>
    %cst_4 = arith.constant dense<0.000000e+00> : vector<8xf32>
    %10 = vector.multi_reduction <add>, %9, %cst_4 [1] : vector<8x16xf32> to vector<8xf32>
    %11 = vector.shape_cast %10 : vector<8xf32> to vector<8x1xf32>
    %12 = math.log %11 : vector<8x1xf32>
    %13 = tpu.iota {dimensions = array<i32: 1>} : vector<8x16xi32>
    %14 = vector.broadcast %4 : vector<8x1xi32> to vector<8x16xi32>
    %15 = arith.cmpi eq, %13, %14 : vector<8x16xi32>
    %cst_5 = arith.constant 0.000000e+00 : f32
    %16 = vector.broadcast %cst_5 : f32 to vector<8x16xf32>
    %17 = arith.select %15, %8, %16 : vector<8x16xi1>, vector<8x16xf32>
    %cst_6 = arith.constant dense<0.000000e+00> : vector<8xf32>
    %18 = vector.multi_reduction <add>, %17, %cst_6 [1] : vector<8x16xf32> to vector<8xf32>
    %19 = vector.shape_cast %18 : vector<8xf32> to vector<8x1xf32>
    %20 = arith.subf %12, %19 : vector<8x1xf32>
    %21 = tpu.iota {dimensions = array<i32: 0>} : vector<8x1xi32>
    %c8_i32 = arith.constant 8 : i32
    %22 = arith.muli %arg0, %c8_i32 : i32
    %23 = vector.broadcast %22 : i32 to vector<8x1xi32>
    %24 = arith.addi %21, %23 : vector<8x1xi32>
    %c8_i32_7 = arith.constant 8 : i32
    %25 = vector.broadcast %c8_i32_7 : i32 to vector<8x1xi32>
    %26 = arith.cmpi slt, %24, %25 : vector<8x1xi32>
    %cst_8 = arith.constant 0.000000e+00 : f32
    %27 = vector.broadcast %cst_8 : f32 to vector<8x1xf32>
    %28 = arith.select %26, %20, %27 : vector<8x1xi1>, vector<8x1xf32>
    %29 = vector.shape_cast %28 : vector<8x1xf32> to vector<1x8x1xf32>
    %cst_9 = arith.constant dense<0.000000e+00> : vector<1xf32>
    %30 = vector.multi_reduction <add>, %29, %cst_9 [1, 2] : vector<1x8x1xf32> to vector<1xf32>
    %31 = vector.shape_cast %30 : vector<1xf32> to vector<1x1x1xf32>
    %32 = vector.extract %31[0, 0, 0] : f32 from vector<1x1x1xf32>
    %c0_10 = arith.constant 0 : index
    %33 = memref.load %arg4[%c0_10] : memref<1xf32, #tpu.memory_space<smem>>
    %34 = arith.addf %33, %32 : f32
    %c0_11 = arith.constant 0 : index
    %35 = memref.load %arg4[%c0_11] : memref<1xf32, #tpu.memory_space<smem>>
    memref.store %34, %arg4[%c0_11] : memref<1xf32, #tpu.memory_space<smem>>
    %c0_i32_12 = arith.constant 0 : i32
    %36 = arith.cmpi eq, %arg0, %c0_i32_12 : i32
    %37 = arith.extui %36 : i1 to i32
    %c0_i32_13 = arith.constant 0 : i32
    %38 = arith.cmpi ne, %37, %c0_i32_13 : i32
    scf.if %38 {
      %c0_14 = arith.constant 0 : index
      %39 = memref.load %arg4[%c0_14] : memref<1xf32, #tpu.memory_space<smem>>
      %cst_15 = arith.constant 1.250000e-01 : f32
      %40 = arith.mulf %39, %cst_15 : f32
      %cst_16 = arith.constant 0.000000e+00 : f32
      %41 = arith.subf %cst_16, %40 : f32
      %42 = math.exp %41 : f32
      %cst_17 = arith.constant 1.000000e+00 : f32
      %43 = arith.subf %cst_17, %42 : f32
      %44 = arith.mulf %43, %43 : f32
      %45 = arith.mulf %44, %40 : f32
      %c0_18 = arith.constant 0 : index
      %c0_19 = arith.constant 0 : index
      %46 = memref.load %arg3[%c0_18, %c0_19] : memref<1x1xf32, #tpu.memory_space<smem>>
      memref.store %45, %arg3[%c0_18, %c0_19] : memref<1x1xf32, #tpu.memory_space<smem>>
    } else {
    }
    return
  }
  func.func @transform_0(%arg0: i32) -> (i32, i32) {
    %c0_i32 = arith.constant 0 : i32
    %c0_i32_0 = arith.constant 0 : i32
    return %arg0, %c0_i32 : i32, i32
  }
  func.func @transform_1(%arg0: i32) -> (i32, i32) {
    %c0_i32 = arith.constant 0 : i32
    %c0_i32_0 = arith.constant 0 : i32
    return %arg0, %c0_i32 : i32, i32
  }
  func.func @transform_2(%arg0: i32) -> (i32, i32) {
    %c0_i32 = arith.constant 0 : i32
    %c0_i32_0 = arith.constant 0 : i32
    %c0_i32_1 = arith.constant 0 : i32
    return %c0_i32, %c0_i32_0 : i32, i32
  }
}

</mosaic_0001>

<bundles_post_ra>
// kernel: tpu_custom_call.1
= control target key start
LH: loop header
LB: loop body
LE: loop exit
PB: predicated region body
PF: predicated region fallthrough
CT: control target
= control target key end

     0   :  { %vm20_vm0 = vcmask 130048   ;;  %s156_s0 = inlined_call_operand.vmem [shape: f32[8,16], index: 0, kind: input, shape index: {}]   ;;  %s157_s1 = inlined_call_operand.vmem [shape: s32[8,1], index: 1, kind: input, shape index: {}]   ;;  %s158_s2 = inlined_call_operand.hbm [shape: f32[1,1], index: 2, kind: output, shape index: {}]  }
   0x1   :  { %v18_v0 = vld [vmem:[%s156_s0] sm:$0xff] }
   0x2   :  { %7 = vsyncpa [#allocation4], 0  ;;  %v21_v1 = vsel %vm20_vm0, %v18_v0, -inf  ;;  %v118_v2 = vmov 0   ;;  %v19_v3 = vld [vmem:[%s157_s1] sm:$0xff]  ;;  %v32_v7 = vlaneseq  ;;  %vm50_vm2 = vcmask 7168  }
   0x3   :  { %99 = vset.pattern.permute.xlu0 %v118_v2  ;;  %s106_s20 = scalar_lea.hbm %s158_s2, 16 }
   0x4   :  { %22 = vmax.xlane.f32.xlu0 %v21_v1  ;;  %v33_v8 = vand.u32 127, %v32_v7  ;;  %p107_p0 = scmp.ne.s32.totalorder %s158_s2, %s106_s20  ;;  %p110_p1 = scmp.lt.u32.totalorder %s106_s20, %s158_s2 }
   0x6   :  { %p112_p2 = pnand %p110_p1, %p107_p0 }
  0x1a   :  { %35 = vperm.xlu0 %99, %v19_v3  }
  0x91   :  { %v23_v4 = vpop.xlane.xlu0 %22 }
  0x92   :  { %v24_v5 = vsub.f32 %v18_v0, %v23_v4 }
  0x94   :  { %v25_v6 = vmul.f32 1.442695, %v24_v5 }
  0x96   :  { %100 = vpow2.f32 %v25_v6 }
  0x99   :  { %v36_v9 = vpop.permute.xlu0 %35 }
  0x9a   :  { %vm37_vm1 = vcmp.eq.s32.totalorder %v33_v8, %v36_v9 }
  0x9b   :  { %v38_v12 = vsel %vm37_vm1, %v24_v5, 0.0 }
  0x9c   :  { %v39_v13 = vsel %vm20_vm0, %v38_v12, 0.0 }
  0xa0   :  { %v101_v10 = vpop.eup %100 }
  0xa1   :  { %v27_v11 = vsel %vm20_vm0, %v101_v10, 0.0 }
  0xa2   :  { %28 = vadd.xlane.f32.xlu1 %v27_v11 }
  0xa6   :  { %40 = vadd.xlane.f32.xlu1 %v39_v13 }
 0x12f   :  { %v29_v14 = vpop.xlane.xlu1 %28 }
 0x130   :  { %102 = vlog2.f32 %v29_v14 }
 0x133   :  { %v41_v17 = vpop.xlane.xlu1 %40 }
 0x13a   :  { %v103_v15 = vpop.eup %102 }
 0x13b   :  { %v31_v16 = vmul.f32 0.6931472, %v103_v15 }
 0x13d   :  { %v42_v18 = vsub.f32 %v31_v16, %v41_v17 }
 0x13f   :  { %v51_v19 = vsel %vm50_vm2, %v42_v18, 0.0 }
 0x140   :  { %52 = vadd.xlane.f32.xlu1 %v51_v19 }
 0x1cd   :  { %v53_v20 = vpop.xlane.xlu1 %52 }
 0x1ce   :  { %v54_v21 = vrot.slane %v53_v20, 4 }
 0x1d0   :  { %v55_v22 = vadd.f32 %v54_v21, %v53_v20 }
 0x1d2   :  { %v56_v23 = vrot.slane %v55_v22, 2 }
 0x1d4   :  { %v57_v24 = vadd.f32 %v56_v23, %v55_v22 }
 0x1d6   :  { %v58_v25 = vrot.slane %v57_v24, 1 }
 0x1d8   :  { %v59_v26 = vadd.f32 %v58_v25, %v57_v24 }
 0x1da   :  { %93 = vpush %v59_v26 }
 0x20b   :  { %s94_s0 = spop %93 }
 0x20c   :  { %s69_s1 = smul.f32 0.125, %s94_s0 }
 0x20e   :  { %s70_s13 = ssub.f32 0.0, %s69_s1 }
 0x210   :  { %v71_v27 = vstv %s70_s13 }
 0x211   :  { %v72_v28 = vmul.f32 1.442695, %v71_v27 }
 0x213   :  { %104 = vpow2.f32 %v72_v28 }
 0x21d   :  { %v105_v29 = vpop.eup %104 }
 0x21e   :  { %95 = vpush %v105_v29 }
 0x24f   :  { %s96_s14 = spop %95 }
 0x250   :  { %s75_s15 = ssub.f32 1.0, %s96_s14 }
 0x252   :  { %s76_s16 = smul.f32 %s75_s15, %s75_s15 }
 0x254   :  { %s77_s17 = smul.f32 %s76_s16, %s69_s1 }
 0x256   :  { %79 = sst [smem:[#allocation3]] %s77_s17 }
 0x257   :  { %115 = shalt.err (!%p112_p2)
}
 0x258   :  { %s119_s25 = smov [#allocation3]  }
 0x259   :  { %87 = dma.smem_to_hbm %s119_s25, 16, %s158_s2, [#allocation4]  }
 0x25a   :  { %116 = dma.done.wait [#allocation4], 16  }
 0x25b   :  { %117 = vsyncadd [#allocation4], 4294967280 }
 0x25c   :  { %91 = sfence }
 0x25d   :  { %92 = vsyncpa [#allocation4], 1 }

</bundles_post_ra>
